<compile_context>
chip_gen: v7x
topology: tpu7x:2x2x1
jax: 0.10.0
libtpu: 0.0.40
codegen_flags: <defaults>
</compile_context>

<pallas_src>
import math
import functools

import jax
import jax.numpy as jnp
from jax import lax
from jax.experimental import pallas as pl
from jax.experimental.pallas import tpu as pltpu


def _round_up(n, m):
    return ((n + m - 1) // m) * m


def _proposal_kernel(x_ref, w1_ref, b1_ref, w2_ref, b2_ref, o_ref, *, output_dim):
    # Layer 1: (tile_b, Dp) @ (Dp, Dp) on the MXU, f32 accumulation, f32 epilogue.
    h = jnp.dot(x_ref[...], w1_ref[...], preferred_element_type=jnp.float32)
    h = jnp.maximum(h + b1_ref[...], 0.0)

    # Layer 2: single fused matmul producing [mean lanes | std lanes | zero pad]
    # in one lane-dense panel.  Prior mean/stddev are already folded into the
    # mean columns of w2 / b2 by the wrapper.
    h_c = h.astype(w2_ref.dtype)  # single cast, reused by the one matmul
    y = jnp.dot(h_c, w2_ref[...], preferred_element_type=jnp.float32) + b2_ref[...]

    # exp() only on the std lanes [O, 2*O); mean and padding lanes pass through.
    lane = lax.broadcasted_iota(jnp.int32, y.shape, 1)
    is_std = (lane >= output_dim) & (lane < 2 * output_dim)
    o_ref[...] = jnp.where(is_std, jnp.exp(y), y)


def proposal_normal_normal(x, w1, b1, w2, b2, prior_mean, prior_stddev,
                           output_dim=1, tile_b=512, param_dtype=jnp.float32):
    """Fused ProposalNormalNormal forward on TPU via Pallas.

    Args:
      x:            (B, D) f32 input
      w1:           (D, D) f32    lin1 weight, PyTorch (out, in) layout
      b1:           (D,)   f32    lin1 bias
      w2:           (2*O, D) f32  lin2 weight, PyTorch (out, in) layout
      b2:           (2*O,) f32    lin2 bias
      prior_mean:   scalar f32
      prior_stddev: scalar f32
      output_dim:   O
      tile_b:       batch tile size (sweepable; rounded to a multiple of 8)
      param_dtype:  dtype for x / weights inside the kernel (f32 or bf16 on
                    any generation incl. v5e; accumulation/epilogue stay f32)

    Returns:
      (means, stddevs), each (B, output_dim) f32.
    """
    B, D = x.shape
    O = output_dim
    f32 = jnp.float32

    # ---- Geometry ------------------------------------------------------------
    Dp = _round_up(D, 128)            # feature dim, lane aligned
    Opc = _round_up(2 * O, 128)       # combined [mean | std] output panel

    # Batch tiling: no wrapper-side batch padding; the ragged last block is
    # handled by Pallas (padded reads, masked writeback).  Keep >= 2 grid steps
    # when the batch permits so both TensorCores are used on v7x megacore.
    tile_b = max(8, _round_up(min(tile_b, B), 8))
    if B >= 16:
        tile_b = min(tile_b, _round_up(pl.cdiv(B, 2), 8))
    n_tiles = pl.cdiv(B, tile_b)

    pm = jnp.asarray(prior_mean, f32)
    ps = jnp.asarray(prior_stddev, f32)

    # ---- One-time wrapper-side parameter transforms --------------------------
    # Fold the prior affine into the mean columns:
    #   mu = pm + (h @ W2m^T + b2m) * ps = h @ (W2m * ps)^T + (pm + b2m * ps)
    w1_p = jnp.zeros((Dp, Dp), f32).at[:D, :D].set(w1.T).astype(param_dtype)
    b1_p = jnp.zeros((1, Dp), f32).at[0, :D].set(b1)
    w2_p = (jnp.zeros((Dp, Opc), f32)
            .at[:D, :O].set((w2[:O, :] * ps).T)
            .at[:D, O:2 * O].set(w2[O:, :].T)
            .astype(param_dtype))
    b2_p = (jnp.zeros((1, Opc), f32)
            .at[0, :O].set(pm + b2[:O] * ps)
            .at[0, O:2 * O].set(b2[O:]))

    # x: pad the feature dim only when needed (padded lanes must be exact zeros
    # so they meet the zero rows of w1_p).  The batch is never padded.
    if D == Dp and x.dtype == param_dtype:
        x_p = x
    elif D == Dp:
        x_p = x.astype(param_dtype)
    else:
        x_p = jnp.zeros((B, Dp), param_dtype).at[:, :D].set(x.astype(param_dtype))

    # ---- Specs ----------------------------------------------------------------
    x_spec = pl.BlockSpec((tile_b, Dp), lambda i: (i, 0))
    out_spec = pl.BlockSpec((tile_b, Opc), lambda i: (i, 0))
    # Constant-index weights/biases: single-buffered, VMEM-resident across tiles.
    w1_spec = pl.BlockSpec((Dp, Dp), lambda i: (0, 0), pipeline_mode=pl.Buffered(1))
    b1_spec = pl.BlockSpec((1, Dp), lambda i: (0, 0), pipeline_mode=pl.Buffered(1))
    w2_spec = pl.BlockSpec((Dp, Opc), lambda i: (0, 0), pipeline_mode=pl.Buffered(1))
    b2_spec = pl.BlockSpec((1, Opc), lambda i: (0, 0), pipeline_mode=pl.Buffered(1))

    # ---- VMEM budget (weights counted once; x / out double-buffered) ----------
    psize = jnp.dtype(param_dtype).itemsize
    weight_bytes = (Dp * Dp + Dp * Opc) * psize + (Dp + Opc) * 4
    stream_bytes = 2 * (tile_b * Dp * psize) + 2 * (tile_b * Opc * 4)
    needed = weight_bytes + stream_bytes + (4 << 20)  # + Mosaic scratch headroom
    try:
        vmem_cap = int(pltpu.get_tpu_info().vmem_capacity_bytes)
    except Exception:
        vmem_cap = 64 * 1024 * 1024
    # ~20% headroom: requests top out near 51 MiB on v7x, ~102 MiB on v5e/v6e.
    vmem_limit = int(min(max(needed, 16 << 20), int(0.8 * vmem_cap)))

    cost = pl.CostEstimate(
        flops=2 * B * Dp * Dp + 2 * B * Dp * Opc + 3 * B * Dp + 4 * B * Opc,
        transcendentals=B * Opc,
        bytes_accessed=B * Dp * psize + weight_bytes + B * Opc * 4,
    )

    out = pl.pallas_call(
        functools.partial(_proposal_kernel, output_dim=O),
        out_shape=jax.ShapeDtypeStruct((B, Opc), f32),
        grid=(n_tiles,),
        in_specs=[x_spec, w1_spec, b1_spec, w2_spec, b2_spec],
        out_specs=out_spec,
        compiler_params=pltpu.CompilerParams(
            dimension_semantics=("parallel",),
            vmem_limit_bytes=vmem_limit,
        ),
        cost_estimate=cost,
    )(x_p, w1_p, b1_p, w2_p, b2_p)

    # Mean / std lanes sliced out in the wrapper (kernel stores are lane-dense).
    return out[:, :O], out[:, O:2 * O]


def init_params(key, input_dim, output_dim=1):
    """Deterministic parameter init mirroring the PyTorch module's __init__."""
    k1, k2, k3, k4 = jax.random.split(key, 4)

    # xavier_uniform with gain = calculate_gain('relu') = sqrt(2)
    gain_relu = math.sqrt(2.0)
    bound1 = gain_relu * math.sqrt(6.0 / (input_dim + input_dim))
    w1 = jax.random.uniform(k1, (input_dim, input_dim), jnp.float32,
                            -bound1, bound1)          # (out, in)
    bb1 = 1.0 / math.sqrt(input_dim)
    b1 = jax.random.uniform(k2, (input_dim,), jnp.float32, -bb1, bb1)

    # xavier_uniform with gain = calculate_gain('linear') = 1.0
    out2 = output_dim * 2
    bound2 = 1.0 * math.sqrt(6.0 / (input_dim + out2))
    w2 = jax.random.uniform(k3, (out2, input_dim), jnp.float32,
                            -bound2, bound2)          # (out, in)
    bb2 = 1.0 / math.sqrt(input_dim)
    b2 = jax.random.uniform(k4, (out2,), jnp.float32, -bb2, bb2)

    return w1, b1, w2, b2


def reference_forward(x, w1, b1, w2, b2, prior_mean, prior_stddev, output_dim=1):
    """Pure-JAX reference matching the PyTorch forward (for verification)."""
    h = jax.nn.relu(x @ w1.T + b1)
    y = h @ w2.T + b2
    means = y[:, :output_dim]
    stddevs = jnp.exp(y[:, output_dim:])
    means = prior_mean + means * prior_stddev
    return means, stddevs


if __name__ == "__main__":
    key = jax.random.PRNGKey(0)
    batch = 8
    input_dim = 32
    output_dim = 1

    kx, kp = jax.random.split(key)
    x = jax.random.normal(kx, (batch, input_dim), jnp.float32)
    prior_mean = jnp.float32(0.5)
    prior_stddev = jnp.float32(2.0)

    w1, b1, w2, b2 = init_params(kp, input_dim, output_dim)

    run = jax.jit(functools.partial(proposal_normal_normal,
                                    output_dim=output_dim, tile_b=512,
                                    param_dtype=jnp.float32))
    means, stddevs = run(x, w1, b1, w2, b2, prior_mean, prior_stddev)
    jax.block_until_ready((means, stddevs))

    ref_means, ref_stddevs = reference_forward(
        x, w1, b1, w2, b2, prior_mean, prior_stddev, output_dim)

    assert means.shape == (batch, output_dim)
    assert stddevs.shape == (batch, output_dim)
    assert jnp.allclose(means, ref_means, atol=1e-5, rtol=1e-5)
    assert jnp.allclose(stddevs, ref_stddevs, atol=1e-5, rtol=1e-5)

    # TODO(synk): the PyTorch module returns torch.distributions.Normal; the
    # kernel returns the (means, stddevs) parameter tensors instead.

    print("KERNEL_OK")
</pallas_src>

<mosaic_0001>
module attributes {stable_mosaic.version = 11 : i64} {
  func.func @_proposal_kernel(%arg0: i32, %arg1: memref<8x128xf32, #tpu.memory_space<vmem>>, %arg2: memref<128x128xf32, #tpu.memory_space<vmem>>, %arg3: memref<1x128xf32, #tpu.memory_space<vmem>>, %arg4: memref<128x128xf32, #tpu.memory_space<vmem>>, %arg5: memref<1x128xf32, #tpu.memory_space<vmem>>, %arg6: memref<8x128xf32, #tpu.memory_space<vmem>>) attributes {dimension_semantics = [#tpu.dimension_semantics<parallel>], iteration_bounds = array<i64: 1>, scalar_prefetch = 0 : i64, scratch_operands = 0 : i64, tpu.core_type = #tpu.core_type<tc>, window_params = [{transform_indices = @transform_0, window_bounds = array<i64: 8, 128>}, {pipeline_mode = #tpu.pipeline_mode<synchronous>, transform_indices = @transform_1, window_bounds = array<i64: 128, 128>}, {pipeline_mode = #tpu.pipeline_mode<synchronous>, transform_indices = @transform_2, window_bounds = array<i64: 1, 128>}, {pipeline_mode = #tpu.pipeline_mode<synchronous>, transform_indices = @transform_3, window_bounds = array<i64: 128, 128>}, {pipeline_mode = #tpu.pipeline_mode<synchronous>, transform_indices = @transform_4, window_bounds = array<i64: 1, 128>}, {transform_indices = @transform_5, window_bounds = array<i64: 8, 128>}]} {
    %c0 = arith.constant 0 : index
    %c0_0 = arith.constant 0 : index
    %0 = vector.load %arg1[%c0, %c0_0] : memref<8x128xf32, #tpu.memory_space<vmem>>, vector<8x128xf32>
    %c0_1 = arith.constant 0 : index
    %c0_2 = arith.constant 0 : index
    %1 = vector.load %arg2[%c0_1, %c0_2] : memref<128x128xf32, #tpu.memory_space<vmem>>, vector<128x128xf32>
    %cst = arith.constant dense<0.000000e+00> : vector<8x128xf32>
    %2 = tpu.matmul %0, %1, %cst {dimension_numbers = #tpu.dot_dimension_numbers<[1], [0], [0], [1], [0, 0, 1, 1], [], []>} : vector<8x128xf32>, vector<128x128xf32>, vector<8x128xf32> -> vector<8x128xf32>
    %c0_3 = arith.constant 0 : index
    %c0_4 = arith.constant 0 : index
    %3 = vector.load %arg3[%c0_3, %c0_4] : memref<1x128xf32, #tpu.memory_space<vmem>>, vector<1x128xf32>
    %4 = vector.broadcast %3 : vector<1x128xf32> to vector<8x128xf32>
    %5 = arith.addf %2, %4 : vector<8x128xf32>
    %cst_5 = arith.constant 0.000000e+00 : f32
    %6 = vector.broadcast %cst_5 : f32 to vector<8x128xf32>
    %7 = arith.maximumf %5, %6 : vector<8x128xf32>
    %c0_6 = arith.constant 0 : index
    %c0_7 = arith.constant 0 : index
    %8 = vector.load %arg4[%c0_6, %c0_7] : memref<128x128xf32, #tpu.memory_space<vmem>>, vector<128x128xf32>
    %cst_8 = arith.constant dense<0.000000e+00> : vector<8x128xf32>
    %9 = tpu.matmul %7, %8, %cst_8 {dimension_numbers = #tpu.dot_dimension_numbers<[1], [0], [0], [1], [0, 0, 1, 1], [], []>} : vector<8x128xf32>, vector<128x128xf32>, vector<8x128xf32> -> vector<8x128xf32>
    %c0_9 = arith.constant 0 : index
    %c0_10 = arith.constant 0 : index
    %10 = vector.load %arg5[%c0_9, %c0_10] : memref<1x128xf32, #tpu.memory_space<vmem>>, vector<1x128xf32>
    %11 = vector.broadcast %10 : vector<1x128xf32> to vector<8x128xf32>
    %12 = arith.addf %9, %11 : vector<8x128xf32>
    %13 = tpu.iota {dimensions = array<i32: 1>} : vector<8x128xi32>
    %c1_i32 = arith.constant 1 : i32
    %14 = vector.broadcast %c1_i32 : i32 to vector<8x128xi32>
    %15 = arith.cmpi sge, %13, %14 : vector<8x128xi32>
    %c2_i32 = arith.constant 2 : i32
    %16 = vector.broadcast %c2_i32 : i32 to vector<8x128xi32>
    %17 = arith.cmpi slt, %13, %16 : vector<8x128xi32>
    %18 = arith.andi %15, %17 : vector<8x128xi1>
    %19 = math.exp %12 : vector<8x128xf32>
    %20 = arith.select %18, %19, %12 : vector<8x128xi1>, vector<8x128xf32>
    %c0_11 = arith.constant 0 : index
    %c0_12 = arith.constant 0 : index
    %21 = vector.load %arg6[%c0_11, %c0_12] : memref<8x128xf32, #tpu.memory_space<vmem>>, vector<8x128xf32>
    tpu.vector_store %arg6[%c0_11, %c0_12], %20 {strides = array<i32>} : memref<8x128xf32, #tpu.memory_space<vmem>>, vector<8x128xf32>,
    return
  }
  func.func @transform_0(%arg0: i32) -> (i32, i32) {
    %c0_i32 = arith.constant 0 : i32
    %c0_i32_0 = arith.constant 0 : i32
    return %arg0, %c0_i32 : i32, i32
  }
  func.func @transform_1(%arg0: i32) -> (i32, i32) {
    %c0_i32 = arith.constant 0 : i32
    %c0_i32_0 = arith.constant 0 : i32
    %c0_i32_1 = arith.constant 0 : i32
    return %c0_i32, %c0_i32_0 : i32, i32
  }
  func.func @transform_2(%arg0: i32) -> (i32, i32) {
    %c0_i32 = arith.constant 0 : i32
    %c0_i32_0 = arith.constant 0 : i32
    %c0_i32_1 = arith.constant 0 : i32
    return %c0_i32, %c0_i32_0 : i32, i32
  }
  func.func @transform_3(%arg0: i32) -> (i32, i32) {
    %c0_i32 = arith.constant 0 : i32
    %c0_i32_0 = arith.constant 0 : i32
    %c0_i32_1 = arith.constant 0 : i32
    return %c0_i32, %c0_i32_0 : i32, i32
  }
  func.func @transform_4(%arg0: i32) -> (i32, i32) {
    %c0_i32 = arith.constant 0 : i32
    %c0_i32_0 = arith.constant 0 : i32
    %c0_i32_1 = arith.constant 0 : i32
    return %c0_i32, %c0_i32_0 : i32, i32
  }
  func.func @transform_5(%arg0: i32) -> (i32, i32) {
    %c0_i32 = arith.constant 0 : i32
    %c0_i32_0 = arith.constant 0 : i32
    return %arg0, %c0_i32 : i32, i32
  }
}

</mosaic_0001>

<bundles_post_ra>
// kernel: proposal_normal_normal.1
= control target key start
LH: loop header
LB: loop body
LE: loop exit
PB: predicated region body
PF: predicated region fallthrough
CT: control target
= control target key end

     0   :  { %v380_v0 = vmov 0.0|0.0   ;;  %vm381_vm0 = vmmov 0   ;;  %v382_v4 = vmov 0.0   ;;  %v208_v60 = vlaneseq  ;;  %s537_s1 = inlined_call_operand.vmem [shape: f32[128,128], index: 1, kind: input, shape index: {}]   ;;  %s538_s3 = inlined_call_operand.vmem [shape: f32[128,128], index: 3, kind: input, shape index: {}]   ;;  %s539_s0 = inlined_call_operand.vmem [shape: f32[8,128], index: 0, kind: input, shape index: {}]   ;;  %s540_s2 = inlined_call_operand.vmem [shape: f32[1,128], index: 2, kind: input, shape index: {}]   ;;  %s541_s4 = inlined_call_operand.vmem [shape: f32[1,128], index: 4, kind: input, shape index: {}]   ;;  %s542_s5 = inlined_call_operand.vmem [shape: f32[8,128], index: 5, kind: output, shape index: {}]  }
   0x1   :  { %327 = vmatprep.subr.bf16.mxu0 %v380_v0  ;;  %v21_v1 = vld [vmem:[%s537_s1] sm:$0xff]  ;;  %v22_v2 = vld [vmem:[%s537_s1 + $0x8] sm:$0xff]  ;;  %v23_v3 = vld [vmem:[%s537_s1 + $0x10] sm:$0xff]  ;;  %289 = vmatprep.mubr.msk.f32.mxu0 %vm381_vm0, %v382_v4 }
   0x2   :  { %v328_v5 = vpack.c.bf16 %v22_v2, %v21_v1  ;;  %v24_v6 = vld [vmem:[%s537_s1 + $0x18] sm:$0xff]  ;;  %351 = vmatprep.subr.bf16.mxu1 %v380_v0  ;;  %324 = vmatprep.mubr.msk.f32.mxu1 %vm381_vm0, %v382_v4  ;;  %v25_v8 = vld [vmem:[%s537_s1 + $0x20] sm:$0xff]  ;;  %v26_v9 = vld [vmem:[%s537_s1 + $0x28] sm:$0xff]  ;;  %v209_v62 = vand.u32 127, %v208_v60 }
   0x3   :  { %v331_v7 = vpack.c.bf16 %v24_v6, %v23_v3  ;;  %v115_v10 = vld [vmem:[%s538_s3] sm:$0xff]  ;;  %v116_v11 = vld [vmem:[%s538_s3 + $0x8] sm:$0xff]  ;;  %v117_v12 = vld [vmem:[%s538_s3 + $0x10] sm:$0xff]  ;;  %v334_v14 = vpack.c.bf16 %v26_v9, %v25_v8 }
   0x4   :  { %329 = vmatpush3.bf16.msra.mxu0 %v328_v5  ;;  %v118_v13 = vld [vmem:[%s538_s3 + $0x18] sm:$0xff]  ;;  %v352_v15 = vpack.c.bf16 %v116_v11, %v115_v10  ;;  %v27_v16 = vld [vmem:[%s537_s1 + $0x30] sm:$0xff]  ;;  %v119_v19 = vld [vmem:[%s538_s3 + $0x20] sm:$0xff]  ;;  %vm210_vm1 = vcmp.ge.s32.totalorder %v209_v62, 1  ;;  %vm211_vm2 = vcmp.lt.s32.totalorder %v209_v62, 2 }
   0x5   :  { %330 = vmatprep.subr.bf16.mxu0 %v380_v0  ;;  %v28_v17 = vld [vmem:[%s537_s1 + $0x38] sm:$0xff]  ;;  %v355_v18 = vpack.c.bf16 %v118_v13, %v117_v12  ;;  %v120_v20 = vld [vmem:[%s538_s3 + $0x28] sm:$0xff]  ;;  %v29_v22 = vld [vmem:[%s537_s1 + $0x40] sm:$0xff] }
   0x6   :  { %353 = vmatpush3.bf16.msra.mxu1 %v352_v15  ;;  %v337_v21 = vpack.c.bf16 %v28_v17, %v27_v16  ;;  %v30_v23 = vld [vmem:[%s537_s1 + $0x48] sm:$0xff]  ;;  %v358_v24 = vpack.c.bf16 %v120_v20, %v119_v19  ;;  %v121_v25 = vld [vmem:[%s538_s3 + $0x30] sm:$0xff]  ;;  %v122_v26 = vld [vmem:[%s538_s3 + $0x38] sm:$0xff] }
   0x7   :  { %354 = vmatprep.subr.bf16.mxu1 %v380_v0  ;;  %v340_v27 = vpack.c.bf16 %v30_v23, %v29_v22  ;;  %v31_v28 = vld [vmem:[%s537_s1 + $0x50] sm:$0xff]  ;;  %v32_v29 = vld [vmem:[%s537_s1 + $0x58] sm:$0xff]  ;;  %v361_v30 = vpack.c.bf16 %v122_v26, %v121_v25  ;;  %v123_v31 = vld [vmem:[%s538_s3 + $0x40] sm:$0xff] }
   0x8   :  { %332 = vmatpush3.bf16.msra.mxu0 %v331_v7  ;;  %v124_v32 = vld [vmem:[%s538_s3 + $0x48] sm:$0xff]  ;;  %v343_v33 = vpack.c.bf16 %v32_v29, %v31_v28  ;;  %v33_v34 = vld [vmem:[%s537_s1 + $0x60] sm:$0xff]  ;;  %v125_v37 = vld [vmem:[%s538_s3 + $0x50] sm:$0xff] }
   0x9   :  { %333 = vmatprep.subr.bf16.mxu0 %v380_v0  ;;  %v34_v35 = vld [vmem:[%s537_s1 + $0x68] sm:$0xff]  ;;  %v364_v36 = vpack.c.bf16 %v124_v32, %v123_v31  ;;  %v126_v38 = vld [vmem:[%s538_s3 + $0x58] sm:$0xff]  ;;  %v35_v40 = vld [vmem:[%s537_s1 + $0x70] sm:$0xff] }
   0xa   :  { %356 = vmatpush3.bf16.msra.mxu1 %v355_v18  ;;  %v346_v39 = vpack.c.bf16 %v34_v35, %v33_v34  ;;  %v36_v41 = vld [vmem:[%s537_s1 + $0x78] sm:$0xff]  ;;  %v367_v42 = vpack.c.bf16 %v126_v38, %v125_v37  ;;  %v127_v43 = vld [vmem:[%s538_s3 + $0x60] sm:$0xff]  ;;  %v128_v44 = vld [vmem:[%s538_s3 + $0x68] sm:$0xff] }
   0xb   :  { %357 = vmatprep.subr.bf16.mxu1 %v380_v0  ;;  %v349_v45 = vpack.c.bf16 %v36_v41, %v35_v40  ;;  %v370_v46 = vpack.c.bf16 %v128_v44, %v127_v43  ;;  %v20_v47 = vld [vmem:[%s539_s0] sm:$0xff]  ;;  %v129_v48 = vld [vmem:[%s538_s3 + $0x70] sm:$0xff]  ;;  %v130_v49 = vld [vmem:[%s538_s3 + $0x78] sm:$0xff] }
   0xc   :  { %335 = vmatpush3.bf16.msra.mxu0 %v334_v14  ;;  %v373_v50 = vpack.c.bf16 %v130_v49, %v129_v48  ;;  %v221_v51 = vld [vmem:[%s540_s2] ss:$0 sm:$0xff]  ;;  %vm212_vm3 = vmand %vm210_vm1, %vm211_vm2 }
   0xd   :  { %336 = vmatprep.subr.bf16.mxu0 %v380_v0  ;;  %v222_v56 = vld [vmem:[%s541_s4] ss:$0 sm:$0xff] }
   0xe   :  { %359 = vmatpush3.bf16.msra.mxu1 %v358_v24 }
   0xf   :  { %360 = vmatprep.subr.bf16.mxu1 %v380_v0 }
  0x10   :  { %338 = vmatpush3.bf16.msra.mxu0 %v337_v21 }
  0x11   :  { %339 = vmatprep.subr.bf16.mxu0 %v380_v0 }
  0x12   :  { %362 = vmatpush3.bf16.msra.mxu1 %v361_v30 }
  0x13   :  { %363 = vmatprep.subr.bf16.mxu1 %v380_v0 }
  0x14   :  { %341 = vmatpush3.bf16.msra.mxu0 %v340_v27 }
  0x15   :  { %342 = vmatprep.subr.bf16.mxu0 %v380_v0 }
  0x16   :  { %365 = vmatpush3.bf16.msra.mxu1 %v364_v36 }
  0x17   :  { %366 = vmatprep.subr.bf16.mxu1 %v380_v0 }
  0x18   :  { %344 = vmatpush3.bf16.msra.mxu0 %v343_v33 }
  0x19   :  { %345 = vmatprep.subr.bf16.mxu0 %v380_v0 }
  0x1a   :  { %368 = vmatpush3.bf16.msra.mxu1 %v367_v42 }
  0x1b   :  { %369 = vmatprep.subr.bf16.mxu1 %v380_v0 }
  0x1c   :  { %347 = vmatpush3.bf16.msra.mxu0 %v346_v39 }
  0x1d   :  { %348 = vmatprep.subr.bf16.mxu0 %v380_v0 }
  0x1e   :  { %371 = vmatpush3.bf16.msra.mxu1 %v370_v46 }
  0x1f   :  { %372 = vmatprep.subr.bf16.mxu1 %v380_v0 }
  0x20   :  { %350 = vmatpush3.bf16.msra.mxu0 %v349_v45 }
  0x22   :  { %374 = vmatpush3.bf16.msra.mxu1 %v373_v50 }
  0x23   :  { %290 = vmatmul.mubr.f32.vlgmr.msra.gmra.mrb[0].mxu0 %v20_v47 }
  0xf6   :  { %v110_v52 = vpop.f32.mrb[0].mxu0 }
  0xf7   :  { %v111_v53 = vadd.f32 %v221_v51, %v110_v52  ;;  %v291_v54 = vpop.f32.mrb[1].mxu0 }
  0xf9   :  { %v114_v55 = vmax.f32 %v111_v53, 0.0 }
  0xfb   :  { %325 = vmatmul.mubr.f32.vlgmr.msra.gmra.mrb[0].mxu1 %v114_v55 }
 0x1ce   :  { %v204_v57 = vpop.f32.mrb[0].mxu1 }
 0x1cf   :  { %v205_v58 = vadd.f32 %v222_v56, %v204_v57  ;;  %v326_v59 = vpop.f32.mrb[1].mxu1 }
 0x1d1   :  { %v213_v61 = vmul.f32 1.442695, %v205_v58 }
 0x1d3   :  { %378 = vpow2.f32 %v213_v61 }
 0x1dd   :  { %v379_v63 = vpop.eup %378 }
 0x1de   :  { %v215_v0 = vsel %vm212_vm3, %v379_v63, %v205_v58 }
 0x1df   :  { %216 = vst [vmem:[%s542_s5] sm:$0xff] %v215_v0 }

</bundles_post_ra>
